<compile_context>
chip_gen: v7x
topology: tpu7x:2x2x1
jax: 0.10.0
libtpu: 0.0.40
codegen_flags: <defaults>
</compile_context>

<pallas_src>
import functools

import jax
import jax.numpy as jnp
from jax.experimental import pallas as pl
from jax.experimental.pallas import tpu as pltpu


def _round_up(a, b):
    return ((a + b - 1) // b) * b


def _sphere_loss_kernel(xn_ref, w_ref, cscale_ref, cbias_ref, label_ref, out_ref,
                        m_sc, l_sc, tgt_sc, *, has_padding):
    cj = pl.program_id(1)
    n_cj = pl.num_programs(1)
    TB = xn_ref.shape[0]
    TC = w_ref.shape[1]

    @pl.when(cj == 0)
    def _init():
        m_sc[...] = jnp.full((TB, 1), -1e30, jnp.float32)
        l_sc[...] = jnp.zeros((TB, 1), jnp.float32)
        tgt_sc[...] = jnp.zeros((TB, 1), jnp.float32)

    # MXU matmul of the pre-normalized x tile against the raw W tile, f32 accum.
    raw = jnp.dot(xn_ref[...], w_ref[...], preferred_element_type=jnp.float32)

    # Per-class inverse weight norm (scale folded in) was precomputed in the
    # wrapper -> a single (1, TC) broadcast multiply on the hot path.
    logits = raw * cscale_ref[...]
    if has_padding:
        # Statically compiled in only when C % TC != 0: additive -1e30 bias on
        # padded class columns (only the last class tile has any).
        logits = logits + cbias_ref[...]

    # Online log-sum-exp across class tiles.
    m_prev = m_sc[...]
    m_new = jnp.maximum(m_prev, jnp.max(logits, axis=-1, keepdims=True))
    alpha = jnp.exp(m_prev - m_new)
    l_sc[...] = alpha * l_sc[...] + jnp.sum(jnp.exp(logits - m_new),
                                            axis=-1, keepdims=True)
    m_sc[...] = m_new

    # Target logit: (1, TC) lane iota vs. tile-local labels (each label falls
    # in exactly one class tile).
    col_ids = jax.lax.broadcasted_iota(jnp.int32, (1, TC), 1)
    local_label = label_ref[...] - cj * TC                      # (TB, 1) int32
    tgt_sc[...] += jnp.sum(jnp.where(col_ids == local_label, logits, 0.0),
                           axis=-1, keepdims=True)

    @pl.when(cj == n_cj - 1)
    def _finalize():
        out_ref[...] = m_sc[...] + jnp.log(l_sc[...]) - tgt_sc[...]


def sphere_loss(x, W, label, scale=14.0, block_b=256, block_c=512,
                compute_dtype=None):
    """x: (B, in_feats), W: (in_feats, n_classes), label: (B,) int -> scalar loss.

    compute_dtype: dtype fed to the MXU (e.g. jnp.bfloat16 for full-rate matmul
    on v5e/v6e/v7x).  Norms, softmax and CE math always run in float32.
    """
    B, D = x.shape
    Dw, C = W.shape
    assert D == Dw, (D, Dw)
    assert B > 0 and C > 0

    # ---- one-time prep in the wrapper (fused XLA passes over x and W) -------
    x32 = x.astype(jnp.float32)
    inv_xn = jax.lax.rsqrt(jnp.maximum(jnp.sum(x32 * x32, axis=1, keepdims=True),
                                       1e-24))        # == 1 / clamp(|x|, 1e-12)
    xn = x32 * inv_xn                                  # L2-normalized rows (f32)

    W32 = W.astype(jnp.float32)
    col_scale = (jax.lax.rsqrt(jnp.maximum(jnp.sum(W32 * W32, axis=0,
                                                   keepdims=True), 1e-24))
                 * jnp.float32(scale))                 # (1, C): scale / |W_col|

    cdt = jnp.dtype(compute_dtype) if compute_dtype is not None else jnp.dtype(x.dtype)
    it = cdt.itemsize

    # ---- tile selection: lane-dense TC (mult of 128), TB mult of 8 ----------
    TB = min(int(block_b), _round_up(B, 8))
    TC = min(int(block_c), _round_up(C, 128))

    # Generation-aware VMEM budget (v5e/v6e: 128 MiB, v7x: 64 MiB per core).
    try:
        phys_vmem = int(pltpu.get_tpu_info().vmem_capacity_bytes)
    except Exception:
        phys_vmem = 64 << 20                           # conservative fallback
    vmem_cap = max(16 << 20, (phys_vmem * 3) // 4)

    def _vmem_needed(tb, tc):
        return int(2 * tb * D * it            # x tile (double-buffered)
                   + 2 * D * tc * it          # W tile (double-buffered, streamed)
                   + 2 * 2 * tc * 4           # col scale / bias tiles
                   + 8 * tb * tc * 4          # f32 logits temporaries headroom
                   + 3 * tb * 4               # LSE scratch
                   + (2 << 20))

    while _vmem_needed(TB, TC) > vmem_cap and TB > 8:
        TB = max(8, _round_up(TB // 2, 8))
    while _vmem_needed(TB, TC) > vmem_cap and TC > 128:
        TC = max(128, _round_up(TC // 2, 128))

    B_pad = _round_up(B, TB)
    C_pad = _round_up(C, TC)
    assert C_pad - C < TC                     # no class tile is fully padded
    has_padding = C_pad != C

    # ---- operand preparation (cast to compute dtype, pad to tile grid) ------
    xn_c = xn.astype(cdt)
    W_c = W32.astype(cdt)
    xn_p = xn_c if B_pad == B else jnp.pad(xn_c, ((0, B_pad - B), (0, 0)))
    W_p = W_c if C_pad == C else jnp.pad(W_c, ((0, 0), (0, C_pad - C)))
    cscale_p = (col_scale if C_pad == C
                else jnp.pad(col_scale, ((0, 0), (0, C_pad - C))))
    cbias = jnp.where(jnp.arange(C_pad)[None, :] < C, 0.0, -1e30
                      ).astype(jnp.float32)            # (1, C_pad)
    lab = label.astype(jnp.int32).reshape(-1, 1)
    lab_p = lab if B_pad == B else jnp.pad(lab, ((0, B_pad - B), (0, 0)))

    grid = (B_pad // TB, C_pad // TC)
    kernel = functools.partial(_sphere_loss_kernel, has_padding=has_padding)
    vmem_limit = int(min(max(_vmem_needed(TB, TC), 16 << 20), vmem_cap))

    per_example = pl.pallas_call(
        kernel,
        out_shape=jax.ShapeDtypeStruct((B_pad, 1), jnp.float32),
        grid_spec=pltpu.PrefetchScalarGridSpec(
            num_scalar_prefetch=0,
            grid=grid,
            in_specs=[
                pl.BlockSpec((TB, D), lambda bi, cj: (bi, 0)),   # normalized x
                pl.BlockSpec((D, TC), lambda bi, cj: (0, cj)),   # raw W (streamed)
                pl.BlockSpec((1, TC), lambda bi, cj: (0, cj)),   # scale/|W_col|
                pl.BlockSpec((1, TC), lambda bi, cj: (0, cj)),   # pad-column bias
                pl.BlockSpec((TB, 1), lambda bi, cj: (bi, 0)),   # labels
            ],
            out_specs=pl.BlockSpec((TB, 1), lambda bi, cj: (bi, 0)),
            scratch_shapes=[pltpu.VMEM((TB, 1), jnp.float32)] * 3,  # m, l, tgt
        ),
        compiler_params=pltpu.CompilerParams(
            dimension_semantics=("parallel", "arbitrary"),
            vmem_limit_bytes=vmem_limit),
        cost_estimate=pl.CostEstimate(
            flops=2 * B_pad * D * C_pad,
            transcendentals=B_pad * C_pad,
            # W is re-streamed once per batch tile; x read once per batch tile.
            bytes_accessed=int(it * ((B_pad // TB) * D * C_pad + B_pad * D)
                               + 4 * (2 * C_pad + 2 * B_pad))),
    )(xn_p, W_p, cscale_p, cbias, lab_p)

    # Mean over the real (un-padded) batch rows — done in the wrapper so batch
    # tiles stay fully independent across TensorCores.
    return jnp.mean(per_example[:B, 0])


def _reference_sphere_loss(x, W, label, scale=14.0):
    xn = x / jnp.maximum(jnp.linalg.norm(x, axis=1, keepdims=True), 1e-12)
    wn = W / jnp.maximum(jnp.linalg.norm(W, axis=0, keepdims=True), 1e-12)
    logits = scale * (xn @ wn)
    logz = jax.nn.logsumexp(logits, axis=-1)
    tgt = jnp.take_along_axis(logits, label[:, None], axis=-1)[:, 0]
    return jnp.mean(logz - tgt)


if __name__ == "__main__":
    key = jax.random.PRNGKey(0)
    scale = 14.0

    # Test 1: module-sized small case (single tile).
    B, in_feats, n_classes = 8, 32, 16
    kx, kw, kl, key = jax.random.split(key, 4)
    x = jax.random.normal(kx, (B, in_feats), dtype=jnp.float32)
    xavier_std = (2.0 / (in_feats + n_classes)) ** 0.5   # xavier_normal_, gain=1
    W = jax.random.normal(kw, (in_feats, n_classes), dtype=jnp.float32) * xavier_std
    label = jax.random.randint(kl, (B,), 0, n_classes, dtype=jnp.int32)

    loss = sphere_loss(x, W, label, scale=scale)
    jax.block_until_ready(loss)
    ref = _reference_sphere_loss(x, W, label, scale=scale)
    assert jnp.allclose(loss, ref, atol=1e-4, rtol=1e-4), (loss, ref)

    # Test 2: ragged shapes with multiple batch/class tiles (exercises online
    # LSE accumulation, padded-class bias and the parallel batch axis).
    B2, D2, C2 = 20, 64, 200
    kx, kw, kl, key = jax.random.split(key, 4)
    x2 = jax.random.normal(kx, (B2, D2), dtype=jnp.float32)
    W2 = jax.random.normal(kw, (D2, C2), dtype=jnp.float32) * (2.0 / (D2 + C2)) ** 0.5
    label2 = jax.random.randint(kl, (B2,), 0, C2, dtype=jnp.int32)

    loss2 = sphere_loss(x2, W2, label2, scale=scale, block_b=8, block_c=128)
    jax.block_until_ready(loss2)
    ref2 = _reference_sphere_loss(x2, W2, label2, scale=scale)
    assert jnp.allclose(loss2, ref2, atol=1e-4, rtol=1e-4), (loss2, ref2)

    # Test 3: bf16 compute path (full-rate MXU format) with padded last class
    # tile; norms/LSE stay f32, so only matmul rounding differs from the f32
    # reference -> loose tolerance.
    B3, D3, C3 = 64, 128, 640
    kx, kw, kl, key = jax.random.split(key, 4)
    x3 = jax.random.normal(kx, (B3, D3), dtype=jnp.float32)
    W3 = jax.random.normal(kw, (D3, C3), dtype=jnp.float32) * (2.0 / (D3 + C3)) ** 0.5
    label3 = jax.random.randint(kl, (B3,), 0, C3, dtype=jnp.int32)

    loss3 = sphere_loss(x3, W3, label3, scale=scale, compute_dtype=jnp.bfloat16)
    jax.block_until_ready(loss3)
    ref3 = _reference_sphere_loss(x3, W3, label3, scale=scale)
    assert jnp.isfinite(loss3)
    assert jnp.allclose(loss3, ref3, atol=0.1, rtol=0.0), (loss3, ref3)

    print("KERNEL_OK")
</pallas_src>

<mosaic_0001>
module attributes {stable_mosaic.version = 11 : i64} {
  func.func @_sphere_loss_kernel(%arg0: i32, %arg1: i32, %arg2: memref<8x32xf32, #tpu.memory_space<vmem>>, %arg3: memref<32x128xf32, #tpu.memory_space<vmem>>, %arg4: memref<1x128xf32, #tpu.memory_space<vmem>>, %arg5: memref<1x128xf32, #tpu.memory_space<vmem>>, %arg6: memref<8x1xi32, #tpu.memory_space<vmem>>, %arg7: memref<8x1xf32, #tpu.memory_space<vmem>>, %arg8: memref<8x1xf32, #tpu.memory_space<vmem>>, %arg9: memref<8x1xf32, #tpu.memory_space<vmem>>, %arg10: memref<8x1xf32, #tpu.memory_space<vmem>>) attributes {dimension_semantics = [#tpu.dimension_semantics<parallel>, #tpu.dimension_semantics<arbitrary>], iteration_bounds = array<i64: 1, 1>, scalar_prefetch = 0 : i64, scratch_operands = 3 : i64, tpu.core_type = #tpu.core_type<tc>, window_params = [{transform_indices = @transform_0, window_bounds = array<i64: 8, 32>}, {transform_indices = @transform_1, window_bounds = array<i64: 32, 128>}, {transform_indices = @transform_2, window_bounds = array<i64: 1, 128>}, {transform_indices = @transform_3, window_bounds = array<i64: 1, 128>}, {transform_indices = @transform_4, window_bounds = array<i64: 8, 1>}, {transform_indices = @transform_5, window_bounds = array<i64: 8, 1>}]} {
    %c0_i32 = arith.constant 0 : i32
    %0 = arith.cmpi eq, %arg1, %c0_i32 : i32
    %1 = arith.extui %0 : i1 to i32
    %c0_i32_0 = arith.constant 0 : i32
    %2 = arith.cmpi ne, %1, %c0_i32_0 : i32
    scf.if %2 {
      %cst_28 = arith.constant -1.000000e+30 : f32
      %46 = vector.broadcast %cst_28 : f32 to vector<8x1xf32>
      %c0_29 = arith.constant 0 : index
      %c0_30 = arith.constant 0 : index
      %47 = vector.load %arg8[%c0_29, %c0_30] : memref<8x1xf32, #tpu.memory_space<vmem>>, vector<8x1xf32>
      tpu.vector_store %arg8[%c0_29, %c0_30], %46 {strides = array<i32>} : memref<8x1xf32, #tpu.memory_space<vmem>>, vector<8x1xf32>,
      %cst_31 = arith.constant 0.000000e+00 : f32
      %48 = vector.broadcast %cst_31 : f32 to vector<8x1xf32>
      %c0_32 = arith.constant 0 : index
      %c0_33 = arith.constant 0 : index
      %49 = vector.load %arg9[%c0_32, %c0_33] : memref<8x1xf32, #tpu.memory_space<vmem>>, vector<8x1xf32>
      tpu.vector_store %arg9[%c0_32, %c0_33], %48 {strides = array<i32>} : memref<8x1xf32, #tpu.memory_space<vmem>>, vector<8x1xf32>,
      %cst_34 = arith.constant 0.000000e+00 : f32
      %50 = vector.broadcast %cst_34 : f32 to vector<8x1xf32>
      %c0_35 = arith.constant 0 : index
      %c0_36 = arith.constant 0 : index
      %51 = vector.load %arg10[%c0_35, %c0_36] : memref<8x1xf32, #tpu.memory_space<vmem>>, vector<8x1xf32>
      tpu.vector_store %arg10[%c0_35, %c0_36], %50 {strides = array<i32>} : memref<8x1xf32, #tpu.memory_space<vmem>>, vector<8x1xf32>,
    } else {
    }
    %c0 = arith.constant 0 : index
    %c0_1 = arith.constant 0 : index
    %3 = vector.load %arg2[%c0, %c0_1] : memref<8x32xf32, #tpu.memory_space<vmem>>, vector<8x32xf32>
    %c0_2 = arith.constant 0 : index
    %c0_3 = arith.constant 0 : index
    %4 = vector.load %arg3[%c0_2, %c0_3] : memref<32x128xf32, #tpu.memory_space<vmem>>, vector<32x128xf32>
    %cst = arith.constant dense<0.000000e+00> : vector<8x128xf32>
    %5 = tpu.matmul %3, %4, %cst {dimension_numbers = #tpu.dot_dimension_numbers<[1], [0], [0], [1], [0, 0, 1, 1], [], []>} : vector<8x32xf32>, vector<32x128xf32>, vector<8x128xf32> -> vector<8x128xf32>
    %c0_4 = arith.constant 0 : index
    %c0_5 = arith.constant 0 : index
    %6 = vector.load %arg4[%c0_4, %c0_5] : memref<1x128xf32, #tpu.memory_space<vmem>>, vector<1x128xf32>
    %7 = vector.broadcast %6 : vector<1x128xf32> to vector<8x128xf32>
    %8 = arith.mulf %5, %7 : vector<8x128xf32>
    %c0_6 = arith.constant 0 : index
    %c0_7 = arith.constant 0 : index
    %9 = vector.load %arg5[%c0_6, %c0_7] : memref<1x128xf32, #tpu.memory_space<vmem>>, vector<1x128xf32>
    %10 = vector.broadcast %9 : vector<1x128xf32> to vector<8x128xf32>
    %11 = arith.addf %8, %10 : vector<8x128xf32>
    %c0_8 = arith.constant 0 : index
    %c0_9 = arith.constant 0 : index
    %12 = vector.load %arg8[%c0_8, %c0_9] : memref<8x1xf32, #tpu.memory_space<vmem>>, vector<8x1xf32>
    %cst_10 = arith.constant dense<0xFF800000> : vector<8xf32>
    %13 = vector.multi_reduction <maximumf>, %11, %cst_10 [1] : vector<8x128xf32> to vector<8xf32>
    %14 = vector.shape_cast %13 : vector<8xf32> to vector<8x1xf32>
    %15 = arith.maximumf %12, %14 : vector<8x1xf32>
    %16 = arith.subf %12, %15 : vector<8x1xf32>
    %17 = math.exp %16 : vector<8x1xf32>
    %c0_11 = arith.constant 0 : index
    %c0_12 = arith.constant 0 : index
    %18 = vector.load %arg9[%c0_11, %c0_12] : memref<8x1xf32, #tpu.memory_space<vmem>>, vector<8x1xf32>
    %19 = arith.mulf %17, %18 : vector<8x1xf32>
    %20 = vector.broadcast %15 : vector<8x1xf32> to vector<8x128xf32>
    %21 = arith.subf %11, %20 : vector<8x128xf32>
    %22 = math.exp %21 : vector<8x128xf32>
    %cst_13 = arith.constant dense<0.000000e+00> : vector<8xf32>
    %23 = vector.multi_reduction <add>, %22, %cst_13 [1] : vector<8x128xf32> to vector<8xf32>
    %24 = vector.shape_cast %23 : vector<8xf32> to vector<8x1xf32>
    %25 = arith.addf %19, %24 : vector<8x1xf32>
    %c0_14 = arith.constant 0 : index
    %c0_15 = arith.constant 0 : index
    %26 = vector.load %arg9[%c0_14, %c0_15] : memref<8x1xf32, #tpu.memory_space<vmem>>, vector<8x1xf32>
    tpu.vector_store %arg9[%c0_14, %c0_15], %25 {strides = array<i32>} : memref<8x1xf32, #tpu.memory_space<vmem>>, vector<8x1xf32>,
    %c0_16 = arith.constant 0 : index
    %c0_17 = arith.constant 0 : index
    %27 = vector.load %arg8[%c0_16, %c0_17] : memref<8x1xf32, #tpu.memory_space<vmem>>, vector<8x1xf32>
    tpu.vector_store %arg8[%c0_16, %c0_17], %15 {strides = array<i32>} : memref<8x1xf32, #tpu.memory_space<vmem>>, vector<8x1xf32>,
    %28 = tpu.iota {dimensions = array<i32: 1>} : vector<1x128xi32>
    %c0_18 = arith.constant 0 : index
    %c0_19 = arith.constant 0 : index
    %29 = vector.load %arg6[%c0_18, %c0_19] : memref<8x1xi32, #tpu.memory_space<vmem>>, vector<8x1xi32>
    %c128_i32 = arith.constant 128 : i32
    %30 = arith.muli %arg1, %c128_i32 : i32
    %31 = vector.broadcast %30 : i32 to vector<8x1xi32>
    %32 = arith.subi %29, %31 : vector<8x1xi32>
    %c0_20 = arith.constant 0 : index
    %c0_21 = arith.constant 0 : index
    %33 = vector.load %arg10[%c0_20, %c0_21] : memref<8x1xf32, #tpu.memory_space<vmem>>, vector<8x1xf32>
    %34 = vector.broadcast %28 : vector<1x128xi32> to vector<8x128xi32>
    %35 = vector.broadcast %32 : vector<8x1xi32> to vector<8x128xi32>
    %36 = arith.cmpi eq, %34, %35 : vector<8x128xi32>
    %cst_22 = arith.constant 0.000000e+00 : f32
    %37 = vector.broadcast %cst_22 : f32 to vector<8x128xf32>
    %38 = arith.select %36, %11, %37 : vector<8x128xi1>, vector<8x128xf32>
    %cst_23 = arith.constant dense<0.000000e+00> : vector<8xf32>
    %39 = vector.multi_reduction <add>, %38, %cst_23 [1] : vector<8x128xf32> to vector<8xf32>
    %40 = vector.shape_cast %39 : vector<8xf32> to vector<8x1xf32>
    %41 = arith.addf %33, %40 : vector<8x1xf32>
    %c0_24 = arith.constant 0 : index
    %c0_25 = arith.constant 0 : index
    %42 = vector.load %arg10[%c0_24, %c0_25] : memref<8x1xf32, #tpu.memory_space<vmem>>, vector<8x1xf32>
    tpu.vector_store %arg10[%c0_24, %c0_25], %41 {strides = array<i32>} : memref<8x1xf32, #tpu.memory_space<vmem>>, vector<8x1xf32>,
    %c0_i32_26 = arith.constant 0 : i32
    %43 = arith.cmpi eq, %arg1, %c0_i32_26 : i32
    %44 = arith.extui %43 : i1 to i32
    %c0_i32_27 = arith.constant 0 : i32
    %45 = arith.cmpi ne, %44, %c0_i32_27 : i32
    scf.if %45 {
      %c0_28 = arith.constant 0 : index
      %c0_29 = arith.constant 0 : index
      %46 = vector.load %arg8[%c0_28, %c0_29] : memref<8x1xf32, #tpu.memory_space<vmem>>, vector<8x1xf32>
      %c0_30 = arith.constant 0 : index
      %c0_31 = arith.constant 0 : index
      %47 = vector.load %arg9[%c0_30, %c0_31] : memref<8x1xf32, #tpu.memory_space<vmem>>, vector<8x1xf32>
      %48 = math.log %47 : vector<8x1xf32>
      %49 = arith.addf %46, %48 : vector<8x1xf32>
      %c0_32 = arith.constant 0 : index
      %c0_33 = arith.constant 0 : index
      %50 = vector.load %arg10[%c0_32, %c0_33] : memref<8x1xf32, #tpu.memory_space<vmem>>, vector<8x1xf32>
      %51 = arith.subf %49, %50 : vector<8x1xf32>
      %c0_34 = arith.constant 0 : index
      %c0_35 = arith.constant 0 : index
      %52 = vector.load %arg7[%c0_34, %c0_35] : memref<8x1xf32, #tpu.memory_space<vmem>>, vector<8x1xf32>
      tpu.vector_store %arg7[%c0_34, %c0_35], %51 {strides = array<i32>} : memref<8x1xf32, #tpu.memory_space<vmem>>, vector<8x1xf32>,
    } else {
    }
    return
  }
  func.func @transform_0(%arg0: i32, %arg1: i32) -> (i32, i32) {
    %c0_i32 = arith.constant 0 : i32
    %c0_i32_0 = arith.constant 0 : i32
    return %arg0, %c0_i32 : i32, i32
  }
  func.func @transform_1(%arg0: i32, %arg1: i32) -> (i32, i32) {
    %c0_i32 = arith.constant 0 : i32
    %c0_i32_0 = arith.constant 0 : i32
    return %c0_i32, %arg1 : i32, i32
  }
  func.func @transform_2(%arg0: i32, %arg1: i32) -> (i32, i32) {
    %c0_i32 = arith.constant 0 : i32
    %c0_i32_0 = arith.constant 0 : i32
    return %c0_i32, %arg1 : i32, i32
  }
  func.func @transform_3(%arg0: i32, %arg1: i32) -> (i32, i32) {
    %c0_i32 = arith.constant 0 : i32
    %c0_i32_0 = arith.constant 0 : i32
    return %c0_i32, %arg1 : i32, i32
  }
  func.func @transform_4(%arg0: i32, %arg1: i32) -> (i32, i32) {
    %c0_i32 = arith.constant 0 : i32
    %c0_i32_0 = arith.constant 0 : i32
    return %arg0, %c0_i32 : i32, i32
  }
  func.func @transform_5(%arg0: i32, %arg1: i32) -> (i32, i32) {
    %c0_i32 = arith.constant 0 : i32
    %c0_i32_0 = arith.constant 0 : i32
    return %arg0, %c0_i32 : i32, i32
  }
}

</mosaic_0001>

<bundles_post_ra>
// kernel: tpu_custom_call.1
= control target key start
LH: loop header
LB: loop body
LE: loop exit
PB: predicated region body
PF: predicated region fallthrough
CT: control target
= control target key end

     0   :  { %10 = vsyncpa [#allocation6], 0  ;;  %s257_s18 = smov [#allocation5]   ;;  %s329_s0 = inlined_call_operand.vmem [shape: f32[8,32], index: 0, kind: input, shape index: {}]   ;;  %s330_s1 = inlined_call_operand.hbm [shape: f32[32,128], index: 1, kind: input, shape index: {}]   ;;  %s331_s2 = inlined_call_operand.vmem [shape: f32[1,128], index: 2, kind: input, shape index: {}]   ;;  %s332_s3 = inlined_call_operand.vmem [shape: f32[1,128], index: 3, kind: input, shape index: {}]   ;;  %s333_s4 = inlined_call_operand.vmem [shape: s32[8,1], index: 4, kind: input, shape index: {}]   ;;  %s334_s5 = inlined_call_operand.vmem [shape: f32[8,1], index: 5, kind: output, shape index: {}]  }
   0x1   :  { %s18_s19 = sshll.u32 %s257_s18, 4  ;;  %s233_s22 = scalar_lea.hbm %s330_s1, 512  ;;  %s19_s19 = int_to_ptr.vmem [resolvable:$true] %s18_s19 }
   0x2   :  { %p234_p0 = scmp.ne.s32.totalorder %s330_s1, %s233_s22  ;;  %p237_p1 = scmp.lt.u32.totalorder %s233_s22, %s330_s1 }
   0x4   :  { %p239_p2 = pnand %p237_p1, %p234_p0 }
   0x6   :  { %242 = shalt.err (!%p239_p2)
}
   0x7   :  { %s243_s27 = scalar_lea.vmem %s19_s19, 512  ;;  %p248_p4 = scmp.lt.s32.totalorder %s19_s19, %s19_s19 }
   0x8   :  { %p244_p3 = scmp.ne.s32.totalorder %s19_s19, %s243_s27  ;;  %p249_p5 = scmp.lt.s32.totalorder %s243_s27, %s243_s27 }
   0xa   :  { %p250_p6 = por %p249_p5, %p248_p4 }
   0xc   :  { %p251_p7 = pnand %p250_p6, %p244_p3 }
   0xe   :  { %254 = shalt.err (!%p251_p7)
}
   0xf   :  { %s258_s28 = smov 128   ;;  %s259_s29 = smov 8  }
  0x10   :  { %24 = dma.hbm_to_vmem [thread:$0]  %s330_s1, 512, %s19_s19, [#allocation6], %s258_s28, %s258_s28, %s259_s29  }
  0x11   :  { %255 = dma.done.wait [#allocation6], 512  }
  0x12   :  { %256 = vsyncadd [#allocation6], 4294966784  ;;  %vm38_vm0 = vcmask 7168   ;;  %v260_v0 = vmov 0.0|0.0   ;;  %v261_v1 = vmov 0.0   ;;  %vm262_vm1 = vmmov 0  }
  0x13   :  { %211 = vmatprep.subr.bf16.mxu0 %v260_v0  ;;  %40 = vst.msk [vmem:[#allocation3] sm:$0xff] %vm38_vm0, %v261_v1  ;;  %41 = vst.msk [vmem:[#allocation4] sm:$0xff] %vm38_vm0, %v261_v1  ;;  %208 = vmatprep.mubr.msk.f32.mxu0 %vm262_vm1, %v261_v1  ;;  %v263_v2 = vmov 0   ;;  %v43_v3 = vld [vmem:[#allocation5] sm:$0xff]  ;;  %v44_v4 = vld [vmem:[#allocation5 + $0x8] sm:$0xff]  ;;  %vm47_vm2 = vcmask 261120   ;;  %v160_v25 = vlaneseq }
  0x14   :  { %226 = vset.pattern.permute.xlu1 %v263_v2  ;;  %225 = vset.pattern.permute.xlu0 %v263_v2  ;;  %v45_v5 = vld [vmem:[#allocation5 + $0x10] sm:$0xff]  ;;  %v212_v6 = vpack.c.bf16 %v44_v4, %v43_v3  ;;  %v46_v7 = vld [vmem:[#allocation5 + $0x18] sm:$0xff]  ;;  %v162_v8 = vld [vmem:[%s333_s4] sm:$0xff]  ;;  %v264_v11 = vmov -1e+30  }
  0x15   :  { %168 = vperm.xlu1 %226, %v162_v8   ;;  %v215_v9 = vpack.c.bf16 %v46_v7, %v45_v5  ;;  %v42_v10 = vld [vmem:[%s329_s0] sm:$0xff]  ;;  %39 = vst.msk [vmem:[#allocation2] sm:$0xff] %vm38_vm0, %v264_v11  ;;  %v161_v26 = vand.u32 127, %v160_v25 }
  0x16   :  { %213 = vmatpush3.bf16.msra.mxu0 %v212_v6  ;;  %v193_v12 = vld [vmem:[%s331_s2] ss:$0 sm:$0xff] }
  0x17   :  { %214 = vmatprep.subr.bf16.mxu0 %v260_v0  ;;  %v194_v14 = vld [vmem:[%s332_s3] ss:$0 sm:$0xff] }
  0x1a   :  { %216 = vmatpush3.bf16.msra.mxu0 %v215_v9  ;;  %v144_v32 = vld [vmem:[#allocation3] sm:$0xff]  ;;  %v166_v36 = vld [vmem:[#allocation4] sm:$0xff] }
  0x1c   :  { %v137_v18 = vld [vmem:[#allocation2] sm:$0xff] }
  0x1d   :  { %209 = vmatmul.mubr.msk.f32.vlgmr.msra.gmra.mrb[0].mxu0 %vm47_vm2, %v42_v10 }
  0x94   :  { %v169_v27 = vpop.permute.xlu1 %168 }
  0x95   :  { %vm170_vm3 = vcmp.eq.s32.totalorder %v161_v26, %v169_v27 }
  0xf0   :  { %v117_v13 = vpop.f32.mrb[0].mxu0 }
  0xf1   :  { %v128_v15 = vmul.f32 %v193_v12, %v117_v13  ;;  %v210_v16 = vpop.f32.mrb[1].mxu0 }
  0xf3   :  { %v136_v17 = vadd.f32 %v194_v14, %v128_v15 }
  0xf5   :  { %138 = vmax.xlane.f32.xlu0 %v136_v17  ;;  %v171_v29 = vsel %vm170_vm3, %v136_v17, 0.0 }
 0x182   :  { %v139_v19 = vpop.xlane.xlu0 %138 }
 0x183   :  { %v140_v20 = vmax.f32 %v137_v18, %v139_v19 }
 0x185   :  { %v141_v21 = vsub.f32 %v137_v18, %v140_v20  ;;  %159 = vst.msk [vmem:[#allocation2] sm:$0xff] %vm38_vm0, %v140_v20  ;;  %148 = vperm.xlu0 %225, %v140_v20  }
 0x187   :  { %v142_v30 = vmul.f32 1.442695, %v141_v21 }
 0x18c   :  { %v179_v42 = vld [vmem:[#allocation2] sm:$0xff] }
 0x204   :  { %v149_v22 = vpop.permute.xlu0 %148 }
 0x205   :  { %v151_v23 = vsub.f32 %v136_v17, %v149_v22 }
 0x207   :  { %v152_v24 = vmul.f32 1.442695, %v151_v23 }
 0x209   :  { %227 = vpow2.f32 %v152_v24 }
 0x20a   :  { %229 = vpow2.f32 %v142_v30 }
 0x213   :  { %v228_v28 = vpop.eup %227 }
 0x214   :  { %154 = vadd.xlane.f32.xlu1 %v228_v28  ;;  %v230_v31 = vpop.eup %229 }
 0x215   :  { %v145_v33 = vmul.f32 %v230_v31, %v144_v32 }
 0x218   :  { %172 = vadd.xlane.f32.xlu1 %v171_v29 }
 0x2a1   :  { %v155_v34 = vpop.xlane.xlu1 %154 }
 0x2a2   :  { %v156_v35 = vadd.f32 %v155_v34, %v145_v33 }
 0x2a4   :  { %158 = vst.msk [vmem:[#allocation3] sm:$0xff] %vm38_vm0, %v156_v35 }
 0x2a5   :  { %v173_v37 = vpop.xlane.xlu1 %172 }
 0x2a6   :  { %v174_v38 = vadd.f32 %v173_v37, %v166_v36 }
 0x2a8   :  { %175 = vst.msk [vmem:[#allocation4] sm:$0xff] %vm38_vm0, %v174_v38 }
 0x2ab   :  { %v180_v39 = vld [vmem:[#allocation3] sm:$0xff] }
 0x2ac   :  { %231 = vlog2.f32 %v180_v39 }
 0x2af   :  { %v184_v44 = vld [vmem:[#allocation4] sm:$0xff] }
 0x2b6   :  { %v232_v40 = vpop.eup %231 }
 0x2b7   :  { %v182_v41 = vmul.f32 0.6931472, %v232_v40 }
 0x2b9   :  { %v183_v43 = vadd.f32 %v182_v41, %v179_v42 }
 0x2bb   :  { %v185_v45 = vsub.f32 %v183_v43, %v184_v44 }
 0x2bd   :  { %186 = vst.msk [vmem:[%s334_s5] sm:$0xff] %vm38_vm0, %v185_v45 }
 0x2be   :  { %191 = vsyncpa [#allocation6], 1 }

</bundles_post_ra>
